<compile_context>
chip_gen: v6e
topology: v6e:2x2x1
jax: 0.10.0
libtpu: 0.0.40
codegen_flags: <defaults>
</compile_context>

<pallas_src>
import jax
import jax.numpy as jnp
from jax.experimental import pallas as pl
from jax.experimental.pallas import tpu as pltpu

_LANE = 128
_SUBLANE = 8


def _ce_ls_kernel(coefs_ref, nvalid_ref, targets_ref, logits_ref, out_ref):
    """One batch tile -> one masked partial-sum block.

    coefs_ref:   SMEM (2,)  f32   [coef_on, off]   (coef_on = 1 - delta - off)
    nvalid_ref:  SMEM (1,)  int32 true batch size B
    targets_ref: VMEM (tile_b, 1) int32
    logits_ref:  VMEM (tile_b, C) native dtype
    out_ref:     VMEM (1, 8, 128) f32 — tile partial sum broadcast over block
    """
    tb, C = logits_ref.shape
    coef_on = coefs_ref[0]
    off = coefs_ref[1]
    n_valid = nvalid_ref[0]

    x = logits_ref[...].astype(jnp.float32)          # per-tile upcast in VMEM

    # Numerically stable log-sum-exp along the class (lane) axis.
    m = jnp.max(x, axis=1, keepdims=True)            # (tb, 1)
    z = x - m                                        # (tb, C)
    lse = jnp.log(jnp.sum(jnp.exp(z), axis=1, keepdims=True))   # (tb, 1)

    # z at the target class (one-hot never materialized).
    cls_idx = jax.lax.broadcasted_iota(jnp.int32, (tb, C), 1)
    tgt = targets_ref[...]                           # (tb, 1)
    z_tgt = jnp.sum(jnp.where(cls_idx == tgt, z, 0.0), axis=1, keepdims=True)
    z_sum = jnp.sum(z, axis=1, keepdims=True)

    # sum_c (lse_full - x_c) * (coef_on * onehot_c + off); the max m cancels.
    per_ex = coef_on * (lse - z_tgt) + off * (jnp.float32(C) * lse - z_sum)

    # Mask rows past the true batch size (the ragged last tile reads undefined
    # data; the select guarantees it never reaches the sum, even if NaN/Inf).
    row = pl.program_id(0) * tb + jax.lax.broadcasted_iota(jnp.int32, (tb, 1), 0)
    per_ex = jnp.where(row < n_valid, per_ex, 0.0)

    tile_sum = jnp.sum(per_ex, axis=0, keepdims=True)            # (1, 1)
    out_ref[...] = jnp.broadcast_to(tile_sum, out_ref.shape)


def cross_entropy_with_label_smoothing(inputs, targets, delta=0.0, reduce=True,
                                       num_classes=10, tile_b=None):
    """inputs: (B, num_classes) float (any dtype); targets: (B,) int.

    Returns scalar f32: mean over batch if reduce in (True, 'mean'),
    sum if reduce in (False, 'sum'), of the label-smoothed cross-entropy.
    """
    assert inputs.ndim == 2 and inputs.shape[1] == num_classes
    B, C = inputs.shape

    if reduce in (True, "mean"):
        reduce_mean = True
    elif reduce in (False, "sum"):
        reduce_mean = False
    else:
        raise ValueError(reduce)

    # Smoothing coefficients (guard the C == 1 division-by-zero).
    delta_f = jnp.asarray(delta, dtype=jnp.float32)
    off = delta_f / jnp.float32(C - 1) if C > 1 else jnp.float32(0.0)
    coef_on = jnp.float32(1.0) - delta_f - off
    coefs = jnp.stack([coef_on, off])                 # (2,) f32 -> SMEM
    n_valid = jnp.asarray([B], dtype=jnp.int32)       # (1,) i32 -> SMEM

    # --- batch tiling with lane-padded VMEM math ---------------------------
    itemsize = jnp.dtype(inputs.dtype).itemsize
    padded_c = -(-C // _LANE) * _LANE                 # lane-padded class row
    if tile_b is None:
        # per batch-row VMEM: double-buffered logits + lane-padded (tb,1)
        # int32 targets, plus ~4 lane-padded f32 compute temporaries.
        per_row = 2 * (padded_c * itemsize + _LANE * 4) + 4 * padded_c * 4
        budget = 12 * 1024 * 1024                     # headroom under v5e 16 MiB
        tile_b = (budget // per_row) // _SUBLANE * _SUBLANE
        tile_b = max(_SUBLANE, min(2048, tile_b))
    else:
        tile_b = max(1, int(tile_b))

    if B < _SUBLANE:
        tile_b = B                                    # single block == array dims
    else:
        tile_b = max(_SUBLANE, (tile_b // _SUBLANE) * _SUBLANE)
        tile_b = min(tile_b, (B // _SUBLANE) * _SUBLANE)

    num_tiles = -(-B // tile_b)
    targets2d = targets.astype(jnp.int32).reshape(B, 1)

    cost = pl.CostEstimate(
        flops=6 * B * C,
        transcendentals=B * (C + 1),
        bytes_accessed=B * C * itemsize + B * 4
        + num_tiles * _SUBLANE * _LANE * 4 + 12,
    )

    out = pl.pallas_call(
        _ce_ls_kernel,
        out_shape=jax.ShapeDtypeStruct((num_tiles, _SUBLANE, _LANE), jnp.float32),
        grid=(num_tiles,),
        in_specs=[
            pl.BlockSpec(memory_space=pltpu.SMEM),              # coefs (2,)
            pl.BlockSpec(memory_space=pltpu.SMEM),              # n_valid (1,)
            pl.BlockSpec((tile_b, 1), lambda i: (i, 0)),        # targets
            pl.BlockSpec((tile_b, C), lambda i: (i, 0)),        # logits
        ],
        out_specs=pl.BlockSpec((1, _SUBLANE, _LANE), lambda i: (i, 0, 0)),
        compiler_params=pltpu.CompilerParams(
            dimension_semantics=("parallel",),
            vmem_limit_bytes=32 * 1024 * 1024),
        cost_estimate=cost,
    )(coefs, n_valid, targets2d, inputs)

    total = jnp.sum(out[:, 0, 0])                     # num_tiles partial sums
    return total / jnp.float32(B) if reduce_mean else total


def _reference(inputs, targets, delta, reduce, num_classes):
    onehot = jax.nn.one_hot(targets, num_classes, dtype=jnp.float32)
    off = delta / (num_classes - 1)
    y_sm = (1.0 - delta - off) * onehot + off
    log_p = jax.nn.log_softmax(inputs.astype(jnp.float32), axis=1)
    per_ex = jnp.sum(-log_p * y_sm, axis=1)
    return jnp.mean(per_ex) if reduce else jnp.sum(per_ex)


if __name__ == "__main__":
    key = jax.random.PRNGKey(0)
    k1, k2, k3, k4, k5, k6 = jax.random.split(key, 6)

    NUM_CLASSES = 10
    delta = 0.1

    # Case 1: small single-tile, f32, mean and sum reductions.
    B = 8
    logits = jax.random.normal(k1, (B, NUM_CLASSES), dtype=jnp.float32)
    targets = jax.random.randint(k2, (B,), 0, NUM_CLASSES, dtype=jnp.int32)

    loss = cross_entropy_with_label_smoothing(
        logits, targets, delta=delta, reduce=True, num_classes=NUM_CLASSES)
    loss = jax.block_until_ready(loss)
    ref = _reference(logits, targets, delta, True, NUM_CLASSES)
    assert jnp.allclose(loss, ref, atol=1e-5, rtol=1e-5), (loss, ref)

    loss_sum = cross_entropy_with_label_smoothing(
        logits, targets, delta=delta, reduce="sum", num_classes=NUM_CLASSES)
    loss_sum = jax.block_until_ready(loss_sum)
    ref_sum = _reference(logits, targets, delta, False, NUM_CLASSES)
    assert jnp.allclose(loss_sum, ref_sum, atol=1e-4, rtol=1e-5), (loss_sum, ref_sum)

    # Case 2: bf16 logits, B not a multiple of 8, explicit tile_b=8
    # -> 3 tiles, ragged last tile masked in-kernel (no wrapper padding).
    B2 = 21
    logits2 = jax.random.normal(k3, (B2, NUM_CLASSES), dtype=jnp.bfloat16)
    targets2 = jax.random.randint(k4, (B2,), 0, NUM_CLASSES, dtype=jnp.int32)
    loss2 = cross_entropy_with_label_smoothing(
        logits2, targets2, delta=delta, reduce=True, num_classes=NUM_CLASSES,
        tile_b=8)
    loss2 = jax.block_until_ready(loss2)
    ref2 = _reference(logits2, targets2, delta, True, NUM_CLASSES)
    assert jnp.allclose(loss2, ref2, atol=1e-4, rtol=1e-4), (loss2, ref2)

    # Case 3: same data, default (auto) tiling -> 2 tiles of 16, larger
    # out-of-bounds tail masked in-kernel.
    loss3 = cross_entropy_with_label_smoothing(
        logits2, targets2, delta=delta, reduce="sum", num_classes=NUM_CLASSES)
    loss3 = jax.block_until_ready(loss3)
    ref3 = _reference(logits2, targets2, delta, False, NUM_CLASSES)
    assert jnp.allclose(loss3, ref3, atol=1e-3, rtol=1e-4), (loss3, ref3)

    # Case 4: batch smaller than a sublane (block == full array dims).
    B4 = 5
    logits4 = jax.random.normal(k5, (B4, NUM_CLASSES), dtype=jnp.float32)
    targets4 = jax.random.randint(k6, (B4,), 0, NUM_CLASSES, dtype=jnp.int32)
    loss4 = cross_entropy_with_label_smoothing(
        logits4, targets4, delta=0.0, reduce=True, num_classes=NUM_CLASSES)
    loss4 = jax.block_until_ready(loss4)
    ref4 = _reference(logits4, targets4, 0.0, True, NUM_CLASSES)
    assert jnp.allclose(loss4, ref4, atol=1e-5, rtol=1e-5), (loss4, ref4)

    print("KERNEL_OK")
</pallas_src>

<mosaic_0001>
module attributes {stable_mosaic.version = 11 : i64} {
  func.func @_ce_ls_kernel(%arg0: i32, %arg1: memref<2xf32, #tpu.memory_space<smem>>, %arg2: memref<1xi32, #tpu.memory_space<smem>>, %arg3: memref<8x1xi32, #tpu.memory_space<vmem>>, %arg4: memref<8x10xf32, #tpu.memory_space<vmem>>, %arg5: memref<1x8x128xf32, #tpu.memory_space<vmem>>) attributes {dimension_semantics = [#tpu.dimension_semantics<parallel>], iteration_bounds = array<i64: 1>, scalar_prefetch = 0 : i64, scratch_operands = 0 : i64, tpu.core_type = #tpu.core_type<tc>, window_params = [{transform_indices = @transform_0, window_bounds = array<i64: 2>}, {transform_indices = @transform_1, window_bounds = array<i64: 1>}, {transform_indices = @transform_2, window_bounds = array<i64: 8, 1>}, {transform_indices = @transform_3, window_bounds = array<i64: 8, 10>}, {transform_indices = @transform_4, window_bounds = array<i64: 1, 8, 128>}]} {
    %c0 = arith.constant 0 : index
    %0 = memref.load %arg1[%c0] : memref<2xf32, #tpu.memory_space<smem>>
    %c1 = arith.constant 1 : index
    %1 = memref.load %arg1[%c1] : memref<2xf32, #tpu.memory_space<smem>>
    %c0_0 = arith.constant 0 : index
    %2 = memref.load %arg2[%c0_0] : memref<1xi32, #tpu.memory_space<smem>>
    %c0_1 = arith.constant 0 : index
    %c0_2 = arith.constant 0 : index
    %3 = vector.load %arg4[%c0_1, %c0_2] : memref<8x10xf32, #tpu.memory_space<vmem>>, vector<8x10xf32>
    %cst = arith.constant dense<0xFF800000> : vector<8xf32>
    %4 = vector.multi_reduction <maximumf>, %3, %cst [1] : vector<8x10xf32> to vector<8xf32>
    %5 = vector.shape_cast %4 : vector<8xf32> to vector<8x1xf32>
    %6 = vector.broadcast %5 : vector<8x1xf32> to vector<8x10xf32>
    %7 = arith.subf %3, %6 : vector<8x10xf32>
    %8 = math.exp %7 : vector<8x10xf32>
    %cst_3 = arith.constant dense<0.000000e+00> : vector<8xf32>
    %9 = vector.multi_reduction <add>, %8, %cst_3 [1] : vector<8x10xf32> to vector<8xf32>
    %10 = vector.shape_cast %9 : vector<8xf32> to vector<8x1xf32>
    %11 = math.log %10 : vector<8x1xf32>
    %12 = tpu.iota {dimensions = array<i32: 1>} : vector<8x10xi32>
    %c0_4 = arith.constant 0 : index
    %c0_5 = arith.constant 0 : index
    %13 = vector.load %arg3[%c0_4, %c0_5] : memref<8x1xi32, #tpu.memory_space<vmem>>, vector<8x1xi32>
    %14 = vector.broadcast %13 : vector<8x1xi32> to vector<8x10xi32>
    %15 = arith.cmpi eq, %12, %14 : vector<8x10xi32>
    %cst_6 = arith.constant 0.000000e+00 : f32
    %16 = vector.broadcast %cst_6 : f32 to vector<8x10xf32>
    %17 = arith.select %15, %7, %16 : vector<8x10xi1>, vector<8x10xf32>
    %cst_7 = arith.constant dense<0.000000e+00> : vector<8xf32>
    %18 = vector.multi_reduction <add>, %17, %cst_7 [1] : vector<8x10xf32> to vector<8xf32>
    %19 = vector.shape_cast %18 : vector<8xf32> to vector<8x1xf32>
    %cst_8 = arith.constant dense<0.000000e+00> : vector<8xf32>
    %20 = vector.multi_reduction <add>, %7, %cst_8 [1] : vector<8x10xf32> to vector<8xf32>
    %21 = vector.shape_cast %20 : vector<8xf32> to vector<8x1xf32>
    %22 = arith.subf %11, %19 : vector<8x1xf32>
    %23 = vector.broadcast %0 : f32 to vector<8x1xf32>
    %24 = arith.mulf %23, %22 : vector<8x1xf32>
    %cst_9 = arith.constant 1.000000e+01 : f32
    %25 = vector.broadcast %cst_9 : f32 to vector<8x1xf32>
    %26 = arith.mulf %25, %11 : vector<8x1xf32>
    %27 = arith.subf %26, %21 : vector<8x1xf32>
    %28 = vector.broadcast %1 : f32 to vector<8x1xf32>
    %29 = arith.mulf %28, %27 : vector<8x1xf32>
    %30 = arith.addf %24, %29 : vector<8x1xf32>
    %c8_i32 = arith.constant 8 : i32
    %31 = arith.muli %arg0, %c8_i32 : i32
    %32 = tpu.iota {dimensions = array<i32: 0>} : vector<8x1xi32>
    %33 = vector.broadcast %31 : i32 to vector<8x1xi32>
    %34 = arith.addi %33, %32 : vector<8x1xi32>
    %35 = vector.broadcast %2 : i32 to vector<8x1xi32>
    %36 = arith.cmpi slt, %34, %35 : vector<8x1xi32>
    %cst_10 = arith.constant 0.000000e+00 : f32
    %37 = vector.broadcast %cst_10 : f32 to vector<8x1xf32>
    %38 = arith.select %36, %30, %37 : vector<8x1xi1>, vector<8x1xf32>
    %cst_11 = arith.constant dense<0.000000e+00> : vector<1xf32>
    %39 = vector.multi_reduction <add>, %38, %cst_11 [0] : vector<8x1xf32> to vector<1xf32>
    %40 = vector.shape_cast %39 : vector<1xf32> to vector<1x1xf32>
    %41 = vector.shape_cast %40 : vector<1x1xf32> to vector<1x1x1xf32>
    %42 = vector.broadcast %41 : vector<1x1x1xf32> to vector<1x8x128xf32>
    %c0_12 = arith.constant 0 : index
    %c0_13 = arith.constant 0 : index
    %c0_14 = arith.constant 0 : index
    %43 = vector.load %arg5[%c0_12, %c0_13, %c0_14] : memref<1x8x128xf32, #tpu.memory_space<vmem>>, vector<1x8x128xf32>
    tpu.vector_store %arg5[%c0_12, %c0_13, %c0_14], %42 {strides = array<i32>} : memref<1x8x128xf32, #tpu.memory_space<vmem>>, vector<1x8x128xf32>,
    return
  }
  func.func @transform_0(%arg0: i32) -> i32 {
    %c0_i32 = arith.constant 0 : i32
    %c0_i32_0 = arith.constant 0 : i32
    return %c0_i32 : i32
  }
  func.func @transform_1(%arg0: i32) -> i32 {
    %c0_i32 = arith.constant 0 : i32
    %c0_i32_0 = arith.constant 0 : i32
    return %c0_i32 : i32
  }
  func.func @transform_2(%arg0: i32) -> (i32, i32) {
    %c0_i32 = arith.constant 0 : i32
    %c0_i32_0 = arith.constant 0 : i32
    return %arg0, %c0_i32 : i32, i32
  }
  func.func @transform_3(%arg0: i32) -> (i32, i32) {
    %c0_i32 = arith.constant 0 : i32
    %c0_i32_0 = arith.constant 0 : i32
    return %arg0, %c0_i32 : i32, i32
  }
  func.func @transform_4(%arg0: i32) -> (i32, i32, i32) {
    %c0_i32 = arith.constant 0 : i32
    %c0_i32_0 = arith.constant 0 : i32
    %c0_i32_1 = arith.constant 0 : i32
    return %arg0, %c0_i32, %c0_i32_0 : i32, i32, i32
  }
}

</mosaic_0001>

<bundles_post_ra>
// kernel: tpu_custom_call.1
= control target key start
LH: loop header
LB: loop body
LE: loop exit
PB: predicated region body
PF: predicated region fallthrough
CT: control target
= control target key end

     0   :  { %10 = vsyncpa [#allocation5], 0  ;;  %s192_s0 = inlined_call_operand.vmem [shape: f32[2], index: 0, kind: input, shape index: {}]   ;;  %s193_s1 = inlined_call_operand.<no memory space> [shape: s32[1], index: 1, kind: input, shape index: {}]   ;;  %s194_s2 = inlined_call_operand.vmem [shape: s32[8,1], index: 2, kind: input, shape index: {}]   ;;  %s195_s3 = inlined_call_operand.vmem [shape: f32[8,10], index: 3, kind: input, shape index: {}]   ;;  %s196_s4 = inlined_call_operand.hbm [shape: f32[1,8,128], index: 4, kind: output, shape index: {}]  }
   0x1   :  { %11 = vsyncpa [#allocation4], 0  ;;  %s18_s17 = sshll.u32 %s192_s0, 4  ;;  %s19_s17 = int_to_ptr.vmem [resolvable:$true] %s18_s17 }
   0x2   :  { %s109_s18 = scalar_lea.vmem %s19_s17, 16  ;;  %p114_p1 = scmp.lt.s32.totalorder %s19_s17, %s19_s17 }
   0x3   :  { %p110_p0 = scmp.ne.s32.totalorder %s19_s17, %s109_s18  ;;  %p115_p2 = scmp.lt.s32.totalorder %s109_s18, %s109_s18 }
   0x5   :  { %p116_p3 = por %p115_p2, %p114_p1 }
   0x7   :  { %p117_p4 = pnand %p116_p3, %p110_p0 }
   0x9   :  { %120 = shalt.err (!%p117_p4)
}
   0xa   :  { %s145_s19 = smov [#allocation3]  }
   0xb   :  { %21 = dma.vmem_to_smem %s19_s17, 16, %s145_s19, [#allocation5]  }
   0xc   :  { %141 = dma.done.wait [#allocation5], 16  }
   0xd   :  { %142 = vsyncadd [#allocation5], 4294967280 }
   0xe   :  { %31 = sfence }
   0xf   :  { %v35_v0 = vld [vmem:[%s195_s3] sm:$0xff]  ;;  %vm36_vm0 = vcmask 80896   ;;  %v146_v2 = vmov 0   ;;  %v48_v7 = vlaneseq  ;;  %s100_s3 = sld [smem:[#allocation3 + $0x1]]  ;;  %v75_v26 = vstv %s193_s1  ;;  %s147_s25 = smov [#allocation6]  }
  0x10   :  { %v37_v1 = vsel %vm36_vm0, %v35_v0, -inf  ;;  %104 = vset.pattern.permute.xlu0 %v146_v2  ;;  %v50_v3 = vld [vmem:[%s194_s2] sm:$0xff]  ;;  %s32_s2 = sld [smem:[#allocation3]]  ;;  %s91_s26 = sshll.u32 %s147_s25, 4  ;;  %s92_s26 = int_to_ptr.vmem [resolvable:$true] %s91_s26 }
  0x11   :  { %38 = vmax.xlane.f32.xlu0 %v37_v1  ;;  %v49_v8 = vand.u32 127, %v48_v7  ;;  %v72_v21 = vshrl.u32 %v48_v7, 7  ;;  %s121_s27 = scalar_lea.vmem %s92_s26, 128  ;;  %p126_p6 = scmp.lt.s32.totalorder %s92_s26, %s92_s26 }
  0x12   :  { %p122_p5 = scmp.ne.s32.totalorder %s92_s26, %s121_s27  ;;  %p127_p7 = scmp.lt.s32.totalorder %s121_s27, %s121_s27 }
  0x13   :  { %vm76_vm2 = vcmp.lt.s32.totalorder %v72_v21, %v75_v26 }
  0x14   :  { %p128_p8 = por %p127_p7, %p126_p6 }
  0x15   :  { %v67_v24 = vstv %s100_s3 }
  0x16   :  { %v63_v22 = vstv %s32_s2  ;;  %p129_p9 = pnand %p128_p8, %p122_p5 }
  0x27   :  { %52 = vperm.xlu0 %104, %v50_v3  }
  0x9a   :  { %v39_v4 = vpop.xlane.xlu0 %38 }
  0x9b   :  { %v40_v5 = vsub.f32 %v35_v0, %v39_v4 }
  0x9d   :  { %v41_v6 = vmul.f32 1.442695, %v40_v5  ;;  %v59_v14 = vsel %vm36_vm0, %v40_v5, 0.0 }
  0x9f   :  { %105 = vpow2.f32 %v41_v6 }
  0xa2   :  { %v53_v9 = vpop.permute.xlu0 %52 }
  0xa3   :  { %vm54_vm1 = vcmp.eq.s32.totalorder %v49_v8, %v53_v9 }
  0xa4   :  { %v55_v12 = vsel %vm54_vm1, %v40_v5, 0.0 }
  0xa5   :  { %v56_v13 = vsel %vm36_vm0, %v55_v12, 0.0 }
  0xac   :  { %v106_v10 = vpop.eup %105 }
  0xad   :  { %v43_v11 = vsel %vm36_vm0, %v106_v10, 0.0 }
  0xae   :  { %44 = vadd.xlane.f32.xlu1 %v43_v11 }
  0xb2   :  { %57 = vadd.xlane.f32.xlu1 %v56_v13 }
  0xb6   :  { %60 = vadd.xlane.f32.xlu1 %v59_v14 }
 0x137   :  { %v45_v15 = vpop.xlane.xlu1 %44 }
 0x138   :  { %107 = vlog2.f32 %v45_v15 }
 0x13b   :  { %v58_v16 = vpop.xlane.xlu1 %57 }
 0x13f   :  { %v61_v23 = vpop.xlane.xlu1 %60 }
 0x145   :  { %v108_v17 = vpop.eup %107 }
 0x146   :  { %v47_v18 = vmul.f32 0.6931472, %v108_v17 }
 0x148   :  { %v62_v19 = vsub.f32 %v47_v18, %v58_v16  ;;  %v65_v20 = vmul.f32 10.0, %v47_v18 }
 0x14a   :  { %v66_v25 = vsub.f32 %v65_v20, %v61_v23  ;;  %v64_v27 = vmul.f32 %v63_v22, %v62_v19 }
 0x14c   :  { %v68_v28 = vmul.f32 %v67_v24, %v66_v25 }
 0x14e   :  { %v69_v29 = vadd.f32 %v68_v28, %v64_v27 }
 0x150   :  { %v77_v30 = vsel %vm76_vm2, %v69_v29, 0.0 }
 0x151   :  { %v78_v31 = vrot.slane %v77_v30, 4 }
 0x153   :  { %v79_v32 = vadd.f32 %v78_v31, %v77_v30 }
 0x155   :  { %v80_v33 = vrot.slane %v79_v32, 2 }
 0x157   :  { %v81_v34 = vadd.f32 %v80_v33, %v79_v32 }
 0x159   :  { %v82_v35 = vrot.slane %v81_v34, 1 }
 0x15b   :  { %v83_v36 = vadd.f32 %v82_v35, %v81_v34 }
 0x15d   :  { %84 = vst [vmem:[#allocation6] sm:$0xff] %v83_v36 }
 0x15e   :  { %132 = shalt.err (!%p129_p9)
}
 0x15f   :  { %94 = dma.vmem_to_hbm [thread:$0]  %s92_s26, 128, %s196_s4, [#allocation4]  }
 0x160   :  { %143 = dma.done.wait [#allocation4], 128  }
 0x161   :  { %144 = vsyncadd [#allocation4], 4294967168 }
 0x162   :  { %98 = vsyncpa [#allocation4], 1 }
 0x163   :  { %99 = vsyncpa [#allocation5], 1 }

</bundles_post_ra>
